<compile_context>
chip_gen: v7x
topology: tpu7x:2x2x1
jax: 0.10.0
libtpu: 0.0.40
codegen_flags: <defaults>
</compile_context>

<pallas_src>
import jax
import jax.numpy as jnp
from jax.experimental import pallas as pl
from jax.experimental.pallas import tpu as pltpu

IGNORE_INDEX = 255

_TARGET_BLOCK_BYTES = int(1.5 * 1024 * 1024)   # ~1.5 MiB logits block / step
_MAX_SUBLANE_ROWS = 1024                       # cap on S (bounds unrolling)


def masked_cross_entropy_loss(logits, ground_truth, mean=True, mask=True):
    """logits: [B, C, H, W] float; ground_truth: [B, H, W] int (255 = ignore)."""
    if not (mean and mask):
        # TODO(synk): mean=False returns a dynamically shaped [num_valid, 1]
        # tensor (boolean-mask gather); no static-shape Pallas equivalent.
        raise NotImplementedError("only mean=True, mask=True is implemented")

    B, C, H, W = logits.shape
    HW = H * W
    itemsize = jnp.dtype(logits.dtype).itemsize
    tgt_itemsize = jnp.dtype(ground_truth.dtype).itemsize

    # --- free reshapes: pixels fill both sublane and lane axes -------------
    # [B, C, H, W] -> [B, C, R, 128] (contiguous split of last dim: no copy)
    # [B, H, W]    -> [B, R, 128]    (target dtype kept as-is through DMA)
    if HW % 128:
        # TODO(synk): rare ragged case; this pad costs one extra HBM pass.
        pad = 128 - HW % 128
        logits3 = jnp.pad(logits.reshape(B, C, HW), ((0, 0), (0, 0), (0, pad)))
        gt2 = jnp.pad(ground_truth.reshape(B, HW), ((0, 0), (0, pad)),
                      constant_values=IGNORE_INDEX)
        HW_p = HW + pad
    else:
        logits3 = logits.reshape(B, C, HW)
        gt2 = ground_truth.reshape(B, HW)
        HW_p = HW

    R = HW_p // 128                        # number of 128-pixel lane rows
    logits4 = logits3.reshape(B, C, R, 128)
    gt3 = gt2.reshape(B, R, 128)

    # --- tile sizing --------------------------------------------------------
    # S sublane rows of 128 pixels per grid step; multiple of 8; ~1-2 MiB.
    s = _TARGET_BLOCK_BYTES // max(1, C * 128 * itemsize)
    s = max(8, (s // 8) * 8)
    r_pad8 = ((R + 7) // 8) * 8
    S = int(min(s, r_pad8, _MAX_SUBLANE_ROWS))

    n_tiles = pl.cdiv(R, S)
    # >=2 parallel grid units so v7x megacore is never idle, even at B == 1.
    P = 2 if n_tiles >= 2 else 1
    n_inner = pl.cdiv(n_tiles, P)

    def kernel(logits_ref, tgt_ref, sum_ref, cnt_ref):
        # logits_ref: (C, S, 128)  tgt_ref: (S, 128)  sum/cnt_ref: (8, 128)
        p = pl.program_id(1)
        i = pl.program_id(2)

        @pl.when(i == 0)
        def _():
            sum_ref[...] = jnp.zeros_like(sum_ref)
            cnt_ref[...] = jnp.zeros_like(cnt_ref)

        # Raw (unclamped) tile id; the index_map clamps the DMA so it never
        # reads fully out of bounds, the mask here keeps duplicated /
        # out-of-range rows from contributing to the sums.
        tile = p * n_inner + i
        row = jax.lax.broadcasted_iota(jnp.int32, (S, 128), 0)
        in_range = (tile * S + row) < R

        t = tgt_ref[...].astype(jnp.int32)                    # (S, 128)
        valid = in_range & (t != IGNORE_INDEX)

        # Class-axis max: short unrolled VPU chain in the input dtype.
        m = logits_ref[0]
        for c in range(1, C):
            m = jnp.maximum(m, logits_ref[c])
        m = m.astype(jnp.float32)

        # exp-sum + target-logit gather via per-class compare against an
        # immediate constant (no CxTILE iota / one-hot temporary).
        # TODO(synk): for thousands of classes switch to a fori_loop online LSE.
        denom = jnp.zeros((S, 128), jnp.float32)
        logit_t = jnp.zeros((S, 128), jnp.float32)
        for c in range(C):
            xc = logits_ref[c].astype(jnp.float32)
            denom = denom + jnp.exp(xc - m)
            logit_t = logit_t + jnp.where(t == c, xc, 0.0)

        lse = jnp.log(denom) + m
        # -log_softmax(x)[t] = lse - x[t]; ignored / out-of-range pixels -> 0.
        loss = jnp.where(valid, lse - logit_t, 0.0)            # (S, 128)
        cnt = valid.astype(jnp.float32)

        # Fold (S,128) -> (8,128) with sublane-group-aligned slices before
        # accumulating: outputs stay a few KiB instead of B x tile slabs.
        ls = loss[0:8]
        cs = cnt[0:8]
        for r0 in range(8, S, 8):
            ls = ls + loss[r0:r0 + 8]
            cs = cs + cnt[r0:r0 + 8]
        sum_ref[...] += ls
        cnt_ref[...] += cs

    def logits_map(b, p, i):
        return (b, 0, jnp.minimum(p * n_inner + i, n_tiles - 1), 0)

    def tgt_map(b, p, i):
        return (b, jnp.minimum(p * n_inner + i, n_tiles - 1), 0)

    def out_map(b, p, i):
        return (b, p, 0, 0)

    block_bytes = C * S * 128 * itemsize
    vmem_limit = int(min(32 << 20,
                         max(16 << 20,
                             2 * block_bytes + 2 * S * 128 * tgt_itemsize
                             + 14 * S * 128 * 4 + (4 << 20))))

    n_pix = B * HW
    cost = pl.CostEstimate(
        flops=7 * n_pix * C,
        transcendentals=n_pix * (C + 1),
        bytes_accessed=B * C * HW_p * itemsize + B * HW_p * tgt_itemsize,
    )

    sums, cnts = pl.pallas_call(
        kernel,
        out_shape=(jax.ShapeDtypeStruct((B, P, 8, 128), jnp.float32),
                   jax.ShapeDtypeStruct((B, P, 8, 128), jnp.float32)),
        grid_spec=pltpu.PrefetchScalarGridSpec(
            num_scalar_prefetch=0,
            grid=(B, P, n_inner),
            in_specs=[
                pl.BlockSpec((None, C, S, 128), logits_map),
                pl.BlockSpec((None, S, 128), tgt_map),
            ],
            out_specs=[
                pl.BlockSpec((None, None, 8, 128), out_map),
                pl.BlockSpec((None, None, 8, 128), out_map),
            ],
        ),
        compiler_params=pltpu.CompilerParams(
            dimension_semantics=("parallel", "parallel", "arbitrary"),
            vmem_limit_bytes=vmem_limit,
        ),
        cost_estimate=cost,
    )(logits4, gt3)

    total = jnp.sum(sums)
    count = jnp.sum(cnts)
    # count == 0 (all pixels ignored) yields NaN, matching PyTorch's mean().
    return (total / count).astype(jnp.float32)


def _reference(logits, ground_truth):
    B, C, H, W = logits.shape
    lf = jnp.transpose(logits, (0, 2, 3, 1)).reshape(-1, C)
    tf = ground_truth.reshape(-1)
    valid = tf != IGNORE_INDEX
    logp = jax.nn.log_softmax(lf, axis=-1)
    per = -jnp.take_along_axis(
        logp, jnp.where(valid, tf, 0)[:, None].astype(jnp.int32), axis=1)[:, 0]
    return jnp.sum(jnp.where(valid, per, 0.0)) / jnp.sum(valid.astype(jnp.float32))


if __name__ == "__main__":
    key = jax.random.PRNGKey(0)
    k1, k2, k3 = jax.random.split(key, 3)

    B, C, H, W = 2, 4, 16, 16
    logits = jax.random.normal(k1, (B, C, H, W), dtype=jnp.float32)
    labels = jax.random.randint(k2, (B, H, W), 0, C, dtype=jnp.int32)
    # sprinkle in some ignored pixels (255)
    ignore = jax.random.bernoulli(k3, 0.2, (B, H, W))
    labels = jnp.where(ignore, IGNORE_INDEX, labels)

    loss = masked_cross_entropy_loss(labels=None, logits=logits, ground_truth=labels) \
        if False else masked_cross_entropy_loss(logits, labels)
    loss = jax.block_until_ready(loss)

    ref = jax.block_until_ready(_reference(logits, labels))
    assert jnp.allclose(loss, ref, atol=1e-5, rtol=1e-5), (loss, ref)

    print("KERNEL_OK")
</pallas_src>

<mosaic_0001>
module attributes {stable_mosaic.version = 11 : i64} {
  func.func @kernel(%arg0: i32, %arg1: i32, %arg2: i32, %arg3: memref<1x4x8x128xf32, #tpu.memory_space<vmem>>, %arg4: memref<1x8x128xi32, #tpu.memory_space<vmem>>, %arg5: memref<1x1x8x128xf32, #tpu.memory_space<vmem>>, %arg6: memref<1x1x8x128xf32, #tpu.memory_space<vmem>>) attributes {dimension_semantics = [#tpu.dimension_semantics<parallel>, #tpu.dimension_semantics<parallel>, #tpu.dimension_semantics<arbitrary>], iteration_bounds = array<i64: 2, 1, 1>, scalar_prefetch = 0 : i64, scratch_operands = 0 : i64, tpu.core_type = #tpu.core_type<tc>, window_params = [{transform_indices = @transform_0, window_bounds = array<i64: 1, 4, 8, 128>}, {transform_indices = @transform_1, window_bounds = array<i64: 1, 8, 128>}, {transform_indices = @transform_2, window_bounds = array<i64: 1, 1, 8, 128>}, {transform_indices = @transform_3, window_bounds = array<i64: 1, 1, 8, 128>}]} {
    %c0_i32 = arith.constant 0 : i32
    %0 = arith.cmpi eq, %arg2, %c0_i32 : i32
    %1 = arith.extui %0 : i1 to i32
    %c0_i32_0 = arith.constant 0 : i32
    %2 = arith.cmpi ne, %1, %c0_i32_0 : i32
    scf.if %2 {
      %cst_57 = arith.constant 0.000000e+00 : f32
      %88 = vector.broadcast %cst_57 : f32 to vector<8x128xf32>
      %c0_58 = arith.constant 0 : index
      %c0_59 = arith.constant 0 : index
      %c0_60 = arith.constant 0 : index
      %c0_61 = arith.constant 0 : index
      %89 = vector.load %arg5[%c0_58, %c0_59, %c0_60, %c0_61] : memref<1x1x8x128xf32, #tpu.memory_space<vmem>>, vector<1x1x8x128xf32>
      %90 = vector.shape_cast %89 : vector<1x1x8x128xf32> to vector<8x128xf32>
      %91 = vector.shape_cast %88 : vector<8x128xf32> to vector<1x1x8x128xf32>
      tpu.vector_store %arg5[%c0_58, %c0_59, %c0_60, %c0_61], %91 {strides = array<i32>} : memref<1x1x8x128xf32, #tpu.memory_space<vmem>>, vector<1x1x8x128xf32>,
      %cst_62 = arith.constant 0.000000e+00 : f32
      %92 = vector.broadcast %cst_62 : f32 to vector<8x128xf32>
      %c0_63 = arith.constant 0 : index
      %c0_64 = arith.constant 0 : index
      %c0_65 = arith.constant 0 : index
      %c0_66 = arith.constant 0 : index
      %93 = vector.load %arg6[%c0_63, %c0_64, %c0_65, %c0_66] : memref<1x1x8x128xf32, #tpu.memory_space<vmem>>, vector<1x1x8x128xf32>
      %94 = vector.shape_cast %93 : vector<1x1x8x128xf32> to vector<8x128xf32>
      %95 = vector.shape_cast %92 : vector<8x128xf32> to vector<1x1x8x128xf32>
      tpu.vector_store %arg6[%c0_63, %c0_64, %c0_65, %c0_66], %95 {strides = array<i32>} : memref<1x1x8x128xf32, #tpu.memory_space<vmem>>, vector<1x1x8x128xf32>,
    } else {
    }
    %c1_i32 = arith.constant 1 : i32
    %3 = arith.muli %arg1, %c1_i32 : i32
    %4 = arith.addi %3, %arg2 : i32
    %5 = tpu.iota {dimensions = array<i32: 0>} : vector<8x128xi32>
    %c8_i32 = arith.constant 8 : i32
    %6 = arith.muli %4, %c8_i32 : i32
    %7 = vector.broadcast %6 : i32 to vector<8x128xi32>
    %8 = arith.addi %7, %5 : vector<8x128xi32>
    %c2_i32 = arith.constant 2 : i32
    %9 = vector.broadcast %c2_i32 : i32 to vector<8x128xi32>
    %10 = arith.cmpi slt, %8, %9 : vector<8x128xi32>
    %c0 = arith.constant 0 : index
    %c0_1 = arith.constant 0 : index
    %c0_2 = arith.constant 0 : index
    %11 = vector.load %arg4[%c0, %c0_1, %c0_2] : memref<1x8x128xi32, #tpu.memory_space<vmem>>, vector<1x8x128xi32>
    %12 = vector.shape_cast %11 : vector<1x8x128xi32> to vector<8x128xi32>
    %c255_i32 = arith.constant 255 : i32
    %13 = vector.broadcast %c255_i32 : i32 to vector<8x128xi32>
    %14 = arith.cmpi ne, %12, %13 : vector<8x128xi32>
    %15 = arith.andi %10, %14 : vector<8x128xi1>
    %c0_3 = arith.constant 0 : index
    %c0_4 = arith.constant 0 : index
    %c0_5 = arith.constant 0 : index
    %c0_6 = arith.constant 0 : index
    %16 = vector.load %arg3[%c0_3, %c0_4, %c0_5, %c0_6] : memref<1x4x8x128xf32, #tpu.memory_space<vmem>>, vector<1x1x8x128xf32>
    %17 = vector.shape_cast %16 : vector<1x1x8x128xf32> to vector<8x128xf32>
    %c0_7 = arith.constant 0 : index
    %c1 = arith.constant 1 : index
    %c0_8 = arith.constant 0 : index
    %c0_9 = arith.constant 0 : index
    %18 = vector.load %arg3[%c0_7, %c1, %c0_8, %c0_9] : memref<1x4x8x128xf32, #tpu.memory_space<vmem>>, vector<1x1x8x128xf32>
    %19 = vector.shape_cast %18 : vector<1x1x8x128xf32> to vector<8x128xf32>
    %20 = arith.maximumf %17, %19 : vector<8x128xf32>
    %c0_10 = arith.constant 0 : index
    %c2 = arith.constant 2 : index
    %c0_11 = arith.constant 0 : index
    %c0_12 = arith.constant 0 : index
    %21 = vector.load %arg3[%c0_10, %c2, %c0_11, %c0_12] : memref<1x4x8x128xf32, #tpu.memory_space<vmem>>, vector<1x1x8x128xf32>
    %22 = vector.shape_cast %21 : vector<1x1x8x128xf32> to vector<8x128xf32>
    %23 = arith.maximumf %20, %22 : vector<8x128xf32>
    %c0_13 = arith.constant 0 : index
    %c3 = arith.constant 3 : index
    %c0_14 = arith.constant 0 : index
    %c0_15 = arith.constant 0 : index
    %24 = vector.load %arg3[%c0_13, %c3, %c0_14, %c0_15] : memref<1x4x8x128xf32, #tpu.memory_space<vmem>>, vector<1x1x8x128xf32>
    %25 = vector.shape_cast %24 : vector<1x1x8x128xf32> to vector<8x128xf32>
    %26 = arith.maximumf %23, %25 : vector<8x128xf32>
    %cst = arith.constant 0.000000e+00 : f32
    %27 = vector.broadcast %cst : f32 to vector<8x128xf32>
    %cst_16 = arith.constant 0.000000e+00 : f32
    %28 = vector.broadcast %cst_16 : f32 to vector<8x128xf32>
    %c0_17 = arith.constant 0 : index
    %c0_18 = arith.constant 0 : index
    %c0_19 = arith.constant 0 : index
    %c0_20 = arith.constant 0 : index
    %29 = vector.load %arg3[%c0_17, %c0_18, %c0_19, %c0_20] : memref<1x4x8x128xf32, #tpu.memory_space<vmem>>, vector<1x1x8x128xf32>
    %30 = vector.shape_cast %29 : vector<1x1x8x128xf32> to vector<8x128xf32>
    %31 = arith.subf %30, %26 : vector<8x128xf32>
    %32 = math.exp %31 : vector<8x128xf32>
    %33 = arith.addf %27, %32 : vector<8x128xf32>
    %c0_i32_21 = arith.constant 0 : i32
    %34 = vector.broadcast %c0_i32_21 : i32 to vector<8x128xi32>
    %35 = arith.cmpi eq, %12, %34 : vector<8x128xi32>
    %cst_22 = arith.constant 0.000000e+00 : f32
    %36 = vector.broadcast %cst_22 : f32 to vector<8x128xf32>
    %37 = arith.select %35, %30, %36 : vector<8x128xi1>, vector<8x128xf32>
    %38 = arith.addf %28, %37 : vector<8x128xf32>
    %c0_23 = arith.constant 0 : index
    %c1_24 = arith.constant 1 : index
    %c0_25 = arith.constant 0 : index
    %c0_26 = arith.constant 0 : index
    %39 = vector.load %arg3[%c0_23, %c1_24, %c0_25, %c0_26] : memref<1x4x8x128xf32, #tpu.memory_space<vmem>>, vector<1x1x8x128xf32>
    %40 = vector.shape_cast %39 : vector<1x1x8x128xf32> to vector<8x128xf32>
    %41 = arith.subf %40, %26 : vector<8x128xf32>
    %42 = math.exp %41 : vector<8x128xf32>
    %43 = arith.addf %33, %42 : vector<8x128xf32>
    %c1_i32_27 = arith.constant 1 : i32
    %44 = vector.broadcast %c1_i32_27 : i32 to vector<8x128xi32>
    %45 = arith.cmpi eq, %12, %44 : vector<8x128xi32>
    %cst_28 = arith.constant 0.000000e+00 : f32
    %46 = vector.broadcast %cst_28 : f32 to vector<8x128xf32>
    %47 = arith.select %45, %40, %46 : vector<8x128xi1>, vector<8x128xf32>
    %48 = arith.addf %38, %47 : vector<8x128xf32>
    %c0_29 = arith.constant 0 : index
    %c2_30 = arith.constant 2 : index
    %c0_31 = arith.constant 0 : index
    %c0_32 = arith.constant 0 : index
    %49 = vector.load %arg3[%c0_29, %c2_30, %c0_31, %c0_32] : memref<1x4x8x128xf32, #tpu.memory_space<vmem>>, vector<1x1x8x128xf32>
    %50 = vector.shape_cast %49 : vector<1x1x8x128xf32> to vector<8x128xf32>
    %51 = arith.subf %50, %26 : vector<8x128xf32>
    %52 = math.exp %51 : vector<8x128xf32>
    %53 = arith.addf %43, %52 : vector<8x128xf32>
    %c2_i32_33 = arith.constant 2 : i32
    %54 = vector.broadcast %c2_i32_33 : i32 to vector<8x128xi32>
    %55 = arith.cmpi eq, %12, %54 : vector<8x128xi32>
    %cst_34 = arith.constant 0.000000e+00 : f32
    %56 = vector.broadcast %cst_34 : f32 to vector<8x128xf32>
    %57 = arith.select %55, %50, %56 : vector<8x128xi1>, vector<8x128xf32>
    %58 = arith.addf %48, %57 : vector<8x128xf32>
    %c0_35 = arith.constant 0 : index
    %c3_36 = arith.constant 3 : index
    %c0_37 = arith.constant 0 : index
    %c0_38 = arith.constant 0 : index
    %59 = vector.load %arg3[%c0_35, %c3_36, %c0_37, %c0_38] : memref<1x4x8x128xf32, #tpu.memory_space<vmem>>, vector<1x1x8x128xf32>
    %60 = vector.shape_cast %59 : vector<1x1x8x128xf32> to vector<8x128xf32>
    %61 = arith.subf %60, %26 : vector<8x128xf32>
    %62 = math.exp %61 : vector<8x128xf32>
    %63 = arith.addf %53, %62 : vector<8x128xf32>
    %c3_i32 = arith.constant 3 : i32
    %64 = vector.broadcast %c3_i32 : i32 to vector<8x128xi32>
    %65 = arith.cmpi eq, %12, %64 : vector<8x128xi32>
    %cst_39 = arith.constant 0.000000e+00 : f32
    %66 = vector.broadcast %cst_39 : f32 to vector<8x128xf32>
    %67 = arith.select %65, %60, %66 : vector<8x128xi1>, vector<8x128xf32>
    %68 = arith.addf %58, %67 : vector<8x128xf32>
    %69 = math.log %63 : vector<8x128xf32>
    %70 = arith.addf %69, %26 : vector<8x128xf32>
    %71 = arith.subf %70, %68 : vector<8x128xf32>
    %cst_40 = arith.constant 0.000000e+00 : f32
    %72 = vector.broadcast %cst_40 : f32 to vector<8x128xf32>
    %73 = arith.select %15, %71, %72 : vector<8x128xi1>, vector<8x128xf32>
    %74 = arith.extui %15 : vector<8x128xi1> to vector<8x128xi32>
    %75 = arith.sitofp %74 : vector<8x128xi32> to vector<8x128xf32>
    %c0_41 = arith.constant 0 : index
    %c0_42 = arith.constant 0 : index
    %c0_43 = arith.constant 0 : index
    %c0_44 = arith.constant 0 : index
    %76 = vector.load %arg5[%c0_41, %c0_42, %c0_43, %c0_44] : memref<1x1x8x128xf32, #tpu.memory_space<vmem>>, vector<1x1x8x128xf32>
    %77 = vector.shape_cast %76 : vector<1x1x8x128xf32> to vector<8x128xf32>
    %78 = arith.addf %77, %73 : vector<8x128xf32>
    %c0_45 = arith.constant 0 : index
    %c0_46 = arith.constant 0 : index
    %c0_47 = arith.constant 0 : index
    %c0_48 = arith.constant 0 : index
    %79 = vector.load %arg5[%c0_45, %c0_46, %c0_47, %c0_48] : memref<1x1x8x128xf32, #tpu.memory_space<vmem>>, vector<1x1x8x128xf32>
    %80 = vector.shape_cast %79 : vector<1x1x8x128xf32> to vector<8x128xf32>
    %81 = vector.shape_cast %78 : vector<8x128xf32> to vector<1x1x8x128xf32>
    tpu.vector_store %arg5[%c0_45, %c0_46, %c0_47, %c0_48], %81 {strides = array<i32>} : memref<1x1x8x128xf32, #tpu.memory_space<vmem>>, vector<1x1x8x128xf32>,
    %c0_49 = arith.constant 0 : index
    %c0_50 = arith.constant 0 : index
    %c0_51 = arith.constant 0 : index
    %c0_52 = arith.constant 0 : index
    %82 = vector.load %arg6[%c0_49, %c0_50, %c0_51, %c0_52] : memref<1x1x8x128xf32, #tpu.memory_space<vmem>>, vector<1x1x8x128xf32>
    %83 = vector.shape_cast %82 : vector<1x1x8x128xf32> to vector<8x128xf32>
    %84 = arith.addf %83, %75 : vector<8x128xf32>
    %c0_53 = arith.constant 0 : index
    %c0_54 = arith.constant 0 : index
    %c0_55 = arith.constant 0 : index
    %c0_56 = arith.constant 0 : index
    %85 = vector.load %arg6[%c0_53, %c0_54, %c0_55, %c0_56] : memref<1x1x8x128xf32, #tpu.memory_space<vmem>>, vector<1x1x8x128xf32>
    %86 = vector.shape_cast %85 : vector<1x1x8x128xf32> to vector<8x128xf32>
    %87 = vector.shape_cast %84 : vector<8x128xf32> to vector<1x1x8x128xf32>
    tpu.vector_store %arg6[%c0_53, %c0_54, %c0_55, %c0_56], %87 {strides = array<i32>} : memref<1x1x8x128xf32, #tpu.memory_space<vmem>>, vector<1x1x8x128xf32>,
    return
  }
  func.func @transform_0(%arg0: i32, %arg1: i32, %arg2: i32) -> (i32, i32, i32, i32) {
    %c1_i32 = arith.constant 1 : i32
    %0 = arith.muli %arg1, %c1_i32 : i32
    %1 = arith.addi %0, %arg2 : i32
    %c0_i32 = arith.constant 0 : i32
    %2 = arith.minsi %1, %c0_i32 : i32
    %c0_i32_0 = arith.constant 0 : i32
    %c0_i32_1 = arith.constant 0 : i32
    %c0_i32_2 = arith.constant 0 : i32
    return %arg0, %c0_i32_0, %2, %c0_i32_1 : i32, i32, i32, i32
  }
  func.func @transform_1(%arg0: i32, %arg1: i32, %arg2: i32) -> (i32, i32, i32) {
    %c1_i32 = arith.constant 1 : i32
    %0 = arith.muli %arg1, %c1_i32 : i32
    %1 = arith.addi %0, %arg2 : i32
    %c0_i32 = arith.constant 0 : i32
    %2 = arith.minsi %1, %c0_i32 : i32
    %c0_i32_0 = arith.constant 0 : i32
    %c0_i32_1 = arith.constant 0 : i32
    return %arg0, %2, %c0_i32_0 : i32, i32, i32
  }
  func.func @transform_2(%arg0: i32, %arg1: i32, %arg2: i32) -> (i32, i32, i32, i32) {
    %c0_i32 = arith.constant 0 : i32
    %c0_i32_0 = arith.constant 0 : i32
    %c0_i32_1 = arith.constant 0 : i32
    return %arg0, %arg1, %c0_i32, %c0_i32_0 : i32, i32, i32, i32
  }
  func.func @transform_3(%arg0: i32, %arg1: i32, %arg2: i32) -> (i32, i32, i32, i32) {
    %c0_i32 = arith.constant 0 : i32
    %c0_i32_0 = arith.constant 0 : i32
    %c0_i32_1 = arith.constant 0 : i32
    return %arg0, %arg1, %c0_i32, %c0_i32_0 : i32, i32, i32, i32
  }
}

</mosaic_0001>

<bundles_post_ra>
// kernel: tpu_custom_call.1
= control target key start
LH: loop header
LB: loop body
LE: loop exit
PB: predicated region body
PF: predicated region fallthrough
CT: control target
= control target key end

     0   :  { %9 = vsyncpa [#allocation3], 0  ;;  %s1106_s0 = inlined_call_operand.hbm [shape: f32[2,4,2,128], index: 0, kind: input, shape index: {}]   ;;  %s1107_s1 = inlined_call_operand.hbm [shape: s32[2,2,128], index: 1, kind: input, shape index: {}]   ;;  %s1108_s2 = inlined_call_operand.hbm [shape: f32[2,1,8,128], index: 2, kind: output, shape index: {0}]   ;;  %s1109_s3 = inlined_call_operand.hbm [shape: f32[2,1,8,128], index: 3, kind: output, shape index: {1}]  }
   0x1   :  { %11 = vsyncpa [#allocation3 + $0x1], 0 }
   0x2   :  { %12 = vsyncpa [#allocation6], 0 }
   0x3   :  { %14 = vsyncpa [#allocation6 + $0x1], 0 }
   0x4   :  { %15 = vsyncpa [#allocation4], 0 }
   0x5   :  { %17 = vsyncpa [#allocation4 + $0x1], 0 }
   0x6   :  { %18 = vsyncpa [#allocation9], 0 }
   0x7   :  { %20 = vsyncpa [#allocation9 + $0x1], 0  ;;  %s860_s12 = smov 0   ;;  %s862_s13 = smov 0  }
   0x8   :  { %s864_s14 = smov 0   ;;  %s866_s15 = smov 0  }
   0x9   :  { %s868_s16 = smov 0   ;;  %s870_s17 = smov 0  }
   0xa LB: > { %s578_s18 = sadd.s32 4294967295, %s827_s17   ;;  %s579_s19 = sadd.s32 4294967294, %s827_s17   ;;  %s827_s17 = sphi %s870_s17, %s26_s17   ;;  %s823_s16 = sphi %s868_s16, %s1123_s16   ;;  %s819_s15 = sphi %s866_s15, %s1122_s15   ;;  %s815_s14 = sphi %s864_s14, %s1121_s14   ;;  %s811_s13 = sphi %s862_s13, %s1120_s13   ;;  %s807_s12 = sphi %s860_s12, %s1119_s12  }
   0xb   : > { %s45_s20 = sadd.s32 1, %s823_s16  ;;  %s60_s21 = sadd.s32 1, %s815_s14 }
   0xc   : > { %p47_p0 = scmp.ge.s32.totalorder %s45_s20, 2  ;;  %p67_p1 = scmp.ne.s32.totalorder %s815_s14, %s811_s13 }
   0xd   : > { %p68_p2 = scmp.eq.s32.totalorder %s827_s17, 0  ;;  %p73_p3 = scmp.ne.s32.totalorder %s811_s13, %s807_s12 }
   0xe   : > { %s1125_s20 = smov (%p47_p0, %s45_s20), 0  ;;  %p74_p5 = scmp.eq.s32.totalorder %s578_s18, 0 }
   0xf   : > { %p901_p4 = por %p68_p2, %p67_p1  ;;  %s55_s23 = ssub.s32 %s823_s16, %s1125_s20 }
  0x10   : > { %p133_p6 = scmp.eq.s32.totalorder %s578_s18, 1  ;;  %p58_p7 = scmp.eq.s32.totalorder %s55_s23, 0 }
  0x11   : > { %p907_p8 = por %p74_p5, %p73_p3  ;;  %p139_p10 = scmp.eq.s32.totalorder %s579_s19, 1 }
  0x12   : > { %p911_p9 = por %p133_p6, %p67_p1  ;;  %p1110_p12 = scmp.ge.s32.totalorder %s827_s17, 2 }
  0x13   : > { %s916_s26 = scalar_select %p58_p7, %s815_s14, %s60_s21  }
  0x14   : > { %p918_p11 = por %p139_p10, %p73_p3  ;;  %183 = sbr.rel (%p1110_p12) target bundleno = 78 (0x4e), region = 16 }
  0x16   : > { %s1114_s27 = scalar_select %p918_p11, 1, 0 }
  0x1b   : > { %186 = sbr.rel (!%p901_p4) target bundleno = 47 (0x2f), region = 20 }
  0x22   : > { %s187_s28 = sand.u32 1, %s815_s14  }
  0x23   : > { %s582_s29 = sshll.u32 %s187_s28, 5  ;;  %s188_s30 = scalar_lea.sflag [#allocation3], %s187_s28 }
  0x24   : > { %s191_s4 = scalar_lea.vmem [#allocation2], %s582_s29 }
  0x25   : > { %200 = vsyncadd %s188_s30, 384  ;;  %s604_s5 = sshll.u32 %s823_s16, 7  ;;  %s212_s6 = sld [smem:[#allocation0]]  }
  0x26   : > { %s205_s9 = scalar_lea.hbm %s1106_s0, %s604_s5  ;;  %s220_s10 = sshll.u32 %s191_s4, 4  ;;  %s221_s10 = int_to_ptr.vmem [resolvable:$true] %s220_s10 }
  0x27   : > { %s829_s11 = smov 32   ;;  %s830_s18 = smov 128  }
  0x28   : > { %227 = sst [smem:[#allocation11]] %s829_s11  ;;  %s831_s19 = smov 1  }
  0x29   : > { %229 = sst [smem:[#allocation11 + $0x1]] %s830_s18  ;;  %s832_s28 = smov 2  }
  0x2a   : > { %231 = sst [smem:[#allocation11 + $0x2]] %s831_s19  ;;  %s833_s29 = smov [#allocation10]  }
  0x2b   : > { %s585_s21 = sshll.u32 %s212_s6, 26  ;;  %233 = sst [smem:[#allocation11 + $0x3]] %s829_s11 }
  0x2c   : > { %s586_s23 = sadd.s32 134217728, %s585_s21  ;;  %235 = sst [smem:[#allocation11 + $0x4]] %s829_s11 }
  0x2d   : > { %237 = sst [smem:[#allocation11 + $0x5]] %s832_s28 }
  0x2e   : > { %239 = dma.general %s205_s9, 128, %s221_s10, %s188_s30, %s833_s29, [#allocation11], %s586_s23, 0  }
  0x2f PF: > { %242 = sbr.rel (!%p901_p4) target bundleno = 78 (0x4e), region = 24  ;;  %s243_s4 = sand.u32 (%p901_p4), 1, %s815_s14  }
  0x30   : > { %s587_s5 = sshll.u32 (%p901_p4), %s243_s4, 3  ;;  %s935_s7 = scalar_lea.sflag (%p901_p4), [#allocation6], %s243_s4 }
  0x31   : > { %s247_s8 = scalar_lea.vmem (%p901_p4), [#allocation5], %s587_s5 }
  0x36   : > { %256 = vsyncadd %s935_s7, 96  ;;  %s588_s6 = sshll.u32 %s823_s16, 5  ;;  %s262_s18 = sshll.u32 %s247_s8, 4  ;;  %s263_s18 = int_to_ptr.vmem [resolvable:$true] %s262_s18 }
  0x37   : > { %s942_s21 = scalar_lea.hbm %s1107_s1, %s588_s6  ;;  %s687_s10 = scalar_lea.hbm %s1107_s1, 64 }
  0x38   : > { %s685_s22 = scalar_lea.hbm %s942_s21, 32  ;;  %p688_p0 = scmp.lt.u32.totalorder %s942_s21, %s1107_s1 }
  0x39   : > { %p686_p13 = scmp.ne.s32.totalorder %s942_s21, %s685_s22  ;;  %p689_p1 = scmp.lt.u32.totalorder %s687_s10, %s685_s22 }
  0x3a   : > { %p691_p3 = scmp.lt.u32.totalorder %s685_s22, %s942_s21 }
  0x3b   : > { %p690_p2 = por %p689_p1, %p688_p0 }
  0x3d   : > { %p692_p4 = por %p691_p3, %p690_p2 }
  0x3f   : > { %p693_p5 = pnand %p692_p4, %p686_p13 }
  0x41   : > { %696 = shalt.err (!%p693_p5)
}
  0x42   : > { %s697_s29 = scalar_lea.vmem %s263_s18, 32  ;;  %s834_s4 = smov [#allocation5]  }
  0x43   : > { %p698_p6 = scmp.ne.s32.totalorder %s263_s18, %s697_s29  ;;  %s699_s5 = sshll.u32 %s834_s4, 4  ;;  %s700_s5 = int_to_ptr.vmem [resolvable:$false] %s699_s5 }
  0x44   : > { %s701_s8 = scalar_lea.vmem %s700_s5, 256  ;;  %p702_p7 = scmp.lt.s32.totalorder %s263_s18, %s700_s5 }
  0x45   : > { %p703_p10 = scmp.lt.s32.totalorder %s701_s8, %s697_s29 }
  0x47   : > { %p704_p12 = por %p703_p10, %p702_p7 }
  0x49   : > { %p705_p11 = pnand %p704_p12, %p698_p6 }
  0x4b   : > { %708 = shalt.err (!%p705_p11)
}
  0x4c   : > { %s835_s6 = smov 32   ;;  %s836_s11 = smov 2  }
  0x4d   : > { %268 = dma.hbm_to_vmem [thread:$0]  %s942_s21, 32, %s263_s18, %s935_s7, %s835_s6, %s835_s6, %s836_s11  }
  0x4e PF: > { %p589_p13 = scmp.ge.s32.totalorder %s827_s17, 1  ;;  %p270_p0 = scmp.lt.s32.totalorder %s827_s17, 3 }
  0x50   : > { %p271_p1 = pnand %p589_p13, %p270_p0 }
  0x51   : > { %s959_s19 = sand.u32 (!%p271_p1), 1, %s811_s13  }
  0x52   : > { %274 = sbr.rel (%p271_p1) target bundleno = 169 (0xa9), region = 28  ;;  %s590_s22 = sshll.u32 (!%p271_p1), %s959_s19, 5 }
  0x53   : > { %s277_s30 = scalar_lea.sflag (!%p271_p1), [#allocation3], %s959_s19  ;;  %s280_s9 = scalar_lea.vmem (!%p271_p1), [#allocation2], %s590_s22 }
  0x59   : > { %790 = dma.done.wait (%p907_p8), %s277_s30, 512  }
  0x5a   : > { %792 = vsyncadd (%p907_p8), %s277_s30, 4294966784  ;;  %s968_s7 = sshll.u32 %s959_s19, 3  ;;  %s286_s18 = scalar_lea.sflag [#allocation6], %s959_s19 }
  0x5b   : > { %s289_s21 = scalar_lea.vmem [#allocation5], %s968_s7 }
  0x5c   : > { %794 = dma.done.wait (%p907_p8), %s286_s18, 128  }
  0x5d   : > { %796 = vsyncadd (%p907_p8), %s286_s18, 4294967168  ;;  %v341_v0 = vlaneseq  ;;  %v976_v2 = vld [vmem:[%s289_s21] sm:$0xff]  ;;  %v985_v6 = vld [vmem:[%s280_s9 + $0x10] sm:$0xff]  ;;  %s600_s24 = sshll.u32 %s819_s15, 7  ;;  %s321_s10 = scalar_lea.vmem [#allocation8], %s968_s7  ;;  %v837_v10 = vmov 0.0  }
  0x5e   : > { %v978_v3 = vld [vmem:[%s280_s9] sm:$0xff]  ;;  %v980_v4 = vld [vmem:[%s280_s9 + $0x8] sm:$0xff]  ;;  %vm348_vm1 = vcmp.ne.s32.totalorder %v976_v2, 255  ;;  %v991_v8 = vld [vmem:[%s280_s9 + $0x18] sm:$0xff]  ;;  %s435_s23 = sshll.u32 %s321_s10, 4  ;;  %s1006_s4 = scalar_lea.hbm %s1109_s3, %s600_s24  ;;  %s1008_s23 = int_to_ptr.vmem [resolvable:$true] %s435_s23 }
  0x5f   : > { %v342_v1 = vshrl.u32 %v341_v0, 7  ;;  %v353_v5 = vmax.f32 %v978_v3, %v980_v4  ;;  %s407_s5 = scalar_lea.sflag [#allocation9], %s959_s19  ;;  %s709_s8 = scalar_lea.vmem %s1008_s23, 128 }
  0x60   : > { %p710_p8 = scmp.ne.s32.totalorder %s1008_s23, %s709_s8  ;;  %s838_s6 = smov [#allocation8]  }
  0x61   : > { %vm346_vm0 = vcmp.lt.s32.totalorder %v342_v1, 2  ;;  %v356_v9 = vmax.f32 %v353_v5, %v985_v6  ;;  %s713_s11 = sshll.u32 %s838_s6, 4  ;;  %s714_s11 = int_to_ptr.vmem [resolvable:$false] %s713_s11 }
  0x62   : > { %vm987_vm2 = vmand %vm346_vm0, %vm348_vm1  ;;  %p711_p11 = pnand %p710_p8, %p911_p9  ;;  %s715_s22 = scalar_lea.vmem %s714_s11, 256 }
  0x63   : > { %v597_v11 = vsel %vm987_vm2, 1.0, %v837_v10  ;;  %v999_v12 = vmax.f32 %v356_v9, %v991_v8  ;;  %p716_p2 = scmp.lt.s32.totalorder %s1008_s23, %s714_s11  ;;  %p717_p3 = scmp.lt.s32.totalorder %s715_s22, %s709_s8 }
  0x64   : > { %400 = vst [vmem:[%s321_s10] sm:$0xff] %v597_v11  ;;  %p712_p12 = pneg %p711_p11 }
  0x65   : > { %v360_v13 = vsub.f32 %v978_v3, %v999_v12  ;;  %v367_v14 = vsub.f32 %v980_v4, %v999_v12  ;;  %v374_v15 = vsub.f32 %v985_v6, %v999_v12  ;;  %v381_v16 = vsub.f32 %v991_v8, %v999_v12  ;;  %p718_p4 = por %p717_p3, %p716_p2 }
  0x67   : > { %p719_p5 = pnand %p718_p4, %p712_p12 }
  0x69   : > { %722 = shalt.err (!%p719_p5)
}
  0x6a   : > { %s723_s30 = scalar_lea.hbm %s1006_s4, 128  ;;  %s727_s21 = scalar_lea.hbm %s1109_s3, 256 }
  0x6b   : > { %p724_p6 = scmp.ne.s32.totalorder %s1006_s4, %s723_s30  ;;  %p728_p13 = scmp.lt.u32.totalorder %s1006_s4, %s1109_s3 }
  0x6c   : > { %p729_p0 = scmp.lt.u32.totalorder %s727_s21, %s723_s30  ;;  %p731_p8 = scmp.lt.u32.totalorder %s723_s30, %s1006_s4 }
  0x6d   : > { %p725_p7 = pnand %p724_p6, %p911_p9 }
  0x6e   : > { %p730_p1 = por %p729_p0, %p728_p13 }
  0x6f   : > { %p726_p10 = pneg %p725_p7 }
  0x70   : > { %p732_p11 = por %p731_p8, %p730_p1 }
  0x72   : > { %p733_p12 = pnand %p732_p11, %p726_p10 }
  0x74   : > { %736 = shalt.err (!%p733_p12)
}
  0x75   : > { %608 = dma.vmem_to_hbm [thread:$0]  (%p911_p9), %s1008_s23, 128, %s1006_s4, %s407_s5   ;;  %v361_v17 = vmul.f32 1.442695, %v360_v13  ;;  %v368_v18 = vmul.f32 1.442695, %v367_v14  ;;  %vm364_vm3 = vcmp.eq.s32.totalorder %v976_v2, 0 }
  0x76   : > { %v375_v19 = vmul.f32 1.442695, %v374_v15  ;;  %v382_v20 = vmul.f32 1.442695, %v381_v16  ;;  %vm371_vm4 = vcmp.eq.s32.totalorder %v976_v2, 1  ;;  %v365_v28 = vsel %vm364_vm3, %v978_v3, 0.0  ;;  %s1057_s8 = scalar_lea.hbm %s1108_s2, %s600_s24 }
  0x77   : > { %675 = vpow2.f32 %v361_v17  ;;  %v372_v29 = vsel %vm371_vm4, %v980_v4, 0.0  ;;  %vm378_vm5 = vcmp.eq.s32.totalorder %v976_v2, 2  ;;  %vm385_vm6 = vcmp.eq.s32.totalorder %v976_v2, 3  ;;  %s314_s23 = scalar_lea.vmem [#allocation7], %s968_s7  ;;  %s402_s6 = scalar_lea.sflag [#allocation4], %s959_s19 }
  0x78   : > { %677 = vpow2.f32 %v368_v18  ;;  %v373_v30 = vadd.f32 %v372_v29, %v365_v28  ;;  %v379_v31 = vsel %vm378_vm5, %v985_v6, 0.0  ;;  %v386_v33 = vsel %vm385_vm6, %v991_v8, 0.0  ;;  %s421_s29 = sshll.u32 %s314_s23, 4  ;;  %s839_s7 = smov [#allocation7]   ;;  %s1059_s29 = int_to_ptr.vmem [resolvable:$true] %s421_s29 }
  0x79   : > { %679 = vpow2.f32 %v375_v19  ;;  %s737_s11 = scalar_lea.vmem %s1059_s29, 128  ;;  %s741_s22 = sshll.u32 %s839_s7, 4  ;;  %s742_s22 = int_to_ptr.vmem [resolvable:$false] %s741_s22 }
  0x7a   : > { %681 = vpow2.f32 %v382_v20  ;;  %v380_v32 = vadd.f32 %v379_v31, %v373_v30  ;;  %p738_p2 = scmp.ne.s32.totalorder %s1059_s29, %s737_s11  ;;  %s743_s15 = scalar_lea.vmem %s742_s22, 256 }
  0x7b   : > { %p744_p5 = scmp.lt.s32.totalorder %s1059_s29, %s742_s22  ;;  %p745_p6 = scmp.lt.s32.totalorder %s743_s15, %s737_s11 }
  0x7c   : > { %v387_v35 = vadd.f32 %v386_v33, %v380_v32  ;;  %p739_p3 = pnand %p738_p2, %p911_p9 }
  0x7d   : > { %p746_p7 = por %p745_p6, %p744_p5 }
  0x7e   : > { %p740_p4 = pneg %p739_p3 }
  0x80   : > { %p747_p10 = pnand %p746_p7, %p740_p4 }
  0x81   : > { %v676_v21 = vpop.eup %675 }
  0x82   : > { %v678_v22 = vpop.eup %677 }
  0x83   : > { %v680_v23 = vpop.eup %679  ;;  %v370_v24 = vadd.f32 %v678_v22, %v676_v21 }
  0x84   : > { %v682_v25 = vpop.eup %681 }
  0x85   : > { %v377_v26 = vadd.f32 %v680_v23, %v370_v24 }
  0x87   : > { %v384_v27 = vadd.f32 %v682_v25, %v377_v26 }
  0x89   : > { %683 = vlog2.f32 %v384_v27 }
  0x93   : > { %v684_v34 = vpop.eup %683 }
  0x94   : > { %v389_v36 = vmul.f32 0.6931472, %v684_v34 }
  0x96   : > { %v390_v37 = vadd.f32 %v389_v36, %v999_v12 }
  0x98   : > { %v391_v38 = vsub.f32 %v390_v37, %v387_v35 }
  0x9a   : > { %v392_v39 = vsel %vm987_vm2, %v391_v38, 0.0 }
  0x9b   : > { %397 = vst [vmem:[%s314_s23] sm:$0xff] %v392_v39 }
  0x9c   : > { %750 = shalt.err (!%p747_p10)
}
  0x9d   : > { %s751_s19 = scalar_lea.hbm %s1057_s8, 128  ;;  %s755_s9 = scalar_lea.hbm %s1108_s2, 256 }
  0x9e   : > { %p752_p13 = scmp.ne.s32.totalorder %s1057_s8, %s751_s19  ;;  %p756_p8 = scmp.lt.u32.totalorder %s1057_s8, %s1108_s2 }
  0x9f   : > { %p757_p11 = scmp.lt.u32.totalorder %s755_s9, %s751_s19  ;;  %p759_p2 = scmp.lt.u32.totalorder %s751_s19, %s1057_s8 }
  0xa0   : > { %p753_p0 = pnand %p752_p13, %p911_p9 }
  0xa1   : > { %p758_p12 = por %p757_p11, %p756_p8 }
  0xa2   : > { %p754_p1 = pneg %p753_p0 }
  0xa3   : > { %p760_p3 = por %p759_p2, %p758_p12 }
  0xa5   : > { %p761_p4 = pnand %p760_p3, %p754_p1 }
  0xa7   : > { %764 = shalt.err (!%p761_p4)
}
  0xa8   : > { %607 = dma.vmem_to_hbm [thread:$0]  (%p911_p9), %s1059_s29, 128, %s1057_s8, %s402_s6  }
  0xa9 PF: > { %s447_s10 = sand.u32 1, %s807_s12   ;;  %p1117_p5 = scmp.ne.s32.totalorder %s1114_s27, 0 }
  0xaa   : > { %p1118_p6 = scmp.ge.s32.totalorder %s827_s17, 2  ;;  %s448_s28 = scalar_lea.sflag [#allocation4], %s447_s10 }
  0xac   : > { %p612_p7 = pnand %p1118_p6, %p1117_p5 }
  0xae   : > { %798 = dma.done.wait (!%p612_p7), %s448_s28, 128  }
  0xaf   : > { %800 = vsyncadd (!%p612_p7), %s448_s28, 4294967168  ;;  %s457_s23 = scalar_lea.sflag [#allocation9], %s447_s10 }
  0xb0   : > { %802 = dma.done.wait (!%p612_p7), %s457_s23, 128  }
  0xb1   : > { %804 = vsyncadd (!%p612_p7), %s457_s23, 4294967168  ;;  %s26_s17 = sadd.s32 1, %s827_s17   ;;  %s1119_s12 = smov %s811_s13 }
  0xb2   : > { %p23_p10 = scmp.ge.s32.totalorder %s26_s17, 4   ;;  %s1120_s13 = smov %s815_s14 }
  0xb3   : > { %s1121_s14 = smov %s916_s26  ;;  %s1122_s15 = smov %s823_s16 }
  0xb4   : > { %s1123_s16 = smov %s1125_s20  ;;  %25 = sbr.rel (!%p23_p10) target bundleno = 10 (0xa), region = 115 }
  0xbb   :  { %462 = vsyncpa [#allocation3], 1 }
  0xbc   :  { %464 = vsyncpa [#allocation3 + $0x1], 1 }
  0xbd   :  { %465 = vsyncpa [#allocation6], 1 }
  0xbe   :  { %467 = vsyncpa [#allocation6 + $0x1], 1 }
  0xbf   :  { %468 = vsyncpa [#allocation4], 1 }
  0xc0   :  { %470 = vsyncpa [#allocation4 + $0x1], 1 }
  0xc1   :  { %471 = vsyncpa [#allocation9], 1 }
  0xc2   :  { %473 = vsyncpa [#allocation9 + $0x1], 1 }

</bundles_post_ra>
